<compile_context>
chip_gen: v5e
topology: v5e:2x2
jax: 0.10.0
libtpu: 0.0.40
codegen_flags: <defaults>
</compile_context>

<pallas_src>
import functools
import math

import jax
import jax.numpy as jnp
from jax.experimental import pallas as pl
from jax.experimental.pallas import tpu as pltpu


# ---------------------------------------------------------------------------
# Fused kernel: lane-packed online+target GCN+projector, plus online predictor
# ---------------------------------------------------------------------------
def _byol_fused_kernel(x_ref, adjp_ref, wg_ref, wm_ref, b_ref, q_ref, z_ref,
                       *, num_layers, num_graphs, nodes, f_pad, E, H, P):
    bf16 = jnp.bfloat16
    B = num_graphs
    BN = B * nodes
    E2, H2, P2 = 2 * E, 2 * H, 2 * P
    L = num_layers

    x = x_ref[...]                         # [BN, f_pad]  bf16 (zero-padded features)
    adj = adjp_ref[:BN, :]                 # [BN, BN]     bf16, block-diag A_hat
    poolA = adjp_ref[BN:BN + B, :]         # [B, BN]      bf16, pool @ A_hat

    # ---- packed GCN stack (online ‖ target on lanes) -----------------------
    # layer 0 weight matmul: [BN, f_pad] @ [f_pad, 2E]
    hw = jnp.dot(x, wg_ref[:f_pad, :], preferred_element_type=jnp.float32)

    # interior layers l = 0 .. L-2:  h = A_hat hw + b_l ; ReLU ; hw = h W_{l+1}
    for l in range(L - 1):
        h = jnp.dot(adj, hw.astype(bf16), preferred_element_type=jnp.float32)
        h = jnp.maximum(h + b_ref[l:l + 1, :E2], 0.0)
        r0 = f_pad + l * E2
        hw = jnp.dot(h.astype(bf16), wg_ref[r0:r0 + E2, :],
                     preferred_element_type=jnp.float32)

    # last GCN layer's A_hat-multiply folded with global-avg-pool:
    #   pool @ (A_hat hw + b) = (pool @ A_hat) hw + b   (pool rows sum to 1)
    pooled = jnp.dot(poolA, hw.astype(bf16),
                     preferred_element_type=jnp.float32) + b_ref[L - 1:L, :E2]

    # ---- packed projector (block-diag: both branches at once) --------------
    h1 = jnp.dot(pooled.astype(bf16), wm_ref[:E2, :H2],
                 preferred_element_type=jnp.float32) + b_ref[L:L + 1, :H2]
    h1 = jnp.maximum(h1, 0.0)
    z = jnp.dot(h1.astype(bf16), wm_ref[E2:E2 + H2, :P2],
                preferred_element_type=jnp.float32) + b_ref[L + 1:L + 2, :P2]

    z_on = z[:, :P]                        # online projection  -> predictor
    z_tg = z[:, P:P2]                      # target projection  -> output

    # ---- predictor (online branch only) -------------------------------------
    r = E2 + H2
    g1 = jnp.dot(z_on.astype(bf16), wm_ref[r:r + P, :H],
                 preferred_element_type=jnp.float32) + b_ref[L + 2:L + 3, :H]
    g1 = jnp.maximum(g1, 0.0)
    q = jnp.dot(g1.astype(bf16), wm_ref[r + P:r + P + H, :P],
                preferred_element_type=jnp.float32) + b_ref[L + 3:L + 4, :P]

    # two direct stores (no in-kernel lane concatenate)
    q_ref[...] = q.astype(q_ref.dtype)
    z_ref[...] = z_tg.astype(z_ref.dtype)


# ---------------------------------------------------------------------------
# Wrapper: pack operands into slabs, one pallas_call for the whole forward
# ---------------------------------------------------------------------------
def _blockdiag2(a, b):
    m, n = a.shape
    out = jnp.zeros((2 * m, 2 * n), jnp.float32)
    out = out.at[:m, :n].set(a)
    out = out.at[m:, n:].set(b)
    return out


def byol_forward(adj, x, online, target, num_layers):
    """BYOLWrapper forward: returns (online prediction q, target projection z)."""
    gcn_o, proj_o, pred_o = online
    gcn_t, proj_t, _ = target

    B, N, F_in = x.shape
    BN = B * N
    E = gcn_o[0][0].shape[1]
    H = proj_o[0][0].shape[1]
    P = proj_o[1][0].shape[1]
    E2, H2, P2 = 2 * E, 2 * H, 2 * P
    L = num_layers
    bf16 = jnp.bfloat16

    # pad F_in to the bf16 sublane tile (16) so slab row offsets stay aligned
    F_pad = -(-F_in // 16) * 16

    # node features flattened over graphs: [BN, F_pad] bf16
    x2d = x.reshape(BN, F_in)
    if F_pad != F_in:
        x2d = jnp.pad(x2d, ((0, 0), (0, F_pad - F_in)))
    x2d = x2d.astype(bf16)

    # block-diagonal A_hat (all graphs) + folded mean-pool rows, one slab
    adj_bd = jnp.zeros((BN, BN), jnp.float32)
    for b in range(B):
        adj_bd = adj_bd.at[b * N:(b + 1) * N, b * N:(b + 1) * N].set(adj[b])
    pool = jnp.repeat(jnp.eye(B, dtype=jnp.float32), N, axis=1) / float(N)  # [B, BN]
    adjp = jnp.concatenate([adj_bd, pool @ adj_bd], axis=0).astype(bf16)    # [BN+B, BN]

    # GCN weight slab: lane-packed layer 0 [F_pad, 2E] + block-diag layers 1..L-1
    w0 = jnp.concatenate([gcn_o[0][0], gcn_t[0][0]], axis=1)                # [F_in, 2E]
    if F_pad != F_in:
        w0 = jnp.pad(w0, ((0, F_pad - F_in), (0, 0)))
    w_gcn = jnp.concatenate(
        [w0] + [_blockdiag2(gcn_o[l][0], gcn_t[l][0]) for l in range(1, L)],
        axis=0).astype(bf16)

    # MLP weight slab: block-diag projector (both branches) + online predictor
    WMW = max(H2, P2, H, P)
    padw = lambda w: jnp.pad(w, ((0, 0), (0, WMW - w.shape[1])))
    w_mlp = jnp.concatenate([
        padw(_blockdiag2(proj_o[0][0], proj_t[0][0])),   # [2E, 2H]
        padw(_blockdiag2(proj_o[1][0], proj_t[1][0])),   # [2H, 2P]
        padw(pred_o[0][0]),                              # [P,  H ]
        padw(pred_o[1][0]),                              # [H,  P ]
    ], axis=0).astype(bf16)

    # bias slab (f32): L packed GCN rows, then proj b1/b2 (packed), pred b1/b2
    BW = max(E2, H2, P2, H, P)
    padb = lambda v: jnp.pad(v.reshape(1, -1), ((0, 0), (0, BW - v.size)))
    bias_rows = [padb(jnp.concatenate([gcn_o[l][1], gcn_t[l][1]])) for l in range(L)]
    bias_rows += [padb(jnp.concatenate([proj_o[0][1], proj_t[0][1]])),
                  padb(jnp.concatenate([proj_o[1][1], proj_t[1][1]])),
                  padb(pred_o[0][1]), padb(pred_o[1][1])]
    biases = jnp.concatenate(bias_rows, axis=0).astype(jnp.float32)         # [L+4, BW]

    ops = (x2d, adjp, w_gcn, w_mlp, biases)

    # advisory cost estimate
    flops = 2 * BN * F_pad * E2
    flops += (L - 1) * (2 * BN * BN * E2 + 2 * BN * E2 * E2)
    flops += 2 * B * BN * E2                       # folded pool + last adj multiply
    flops += 2 * B * E2 * H2 + 2 * B * H2 * P2     # packed projector (both branches)
    flops += 2 * B * P * H + 2 * B * H * P         # predictor
    bytes_accessed = sum(math.prod(a.shape) * jnp.dtype(a.dtype).itemsize
                         for a in ops) + 2 * B * P * 4

    vmem_spec = pl.BlockSpec(memory_space=pltpu.MemorySpace.VMEM)
    q, z = pl.pallas_call(
        functools.partial(_byol_fused_kernel, num_layers=L, num_graphs=B,
                          nodes=N, f_pad=F_pad, E=E, H=H, P=P),
        out_shape=(jax.ShapeDtypeStruct((B, P), jnp.float32),
                   jax.ShapeDtypeStruct((B, P), jnp.float32)),
        in_specs=[vmem_spec] * len(ops),
        out_specs=(vmem_spec, vmem_spec),
        cost_estimate=pl.CostEstimate(flops=flops, transcendentals=0,
                                      bytes_accessed=bytes_accessed),
    )(*ops)

    # target branch carries no gradient (torch.no_grad in the reference)
    return q, jax.lax.stop_gradient(z)


# ---------------------------------------------------------------------------
# Parameter construction (deterministic, synthetic)
# ---------------------------------------------------------------------------
def init_branch(key, f_in, E, H, P, num_layers, with_predictor):
    ks = jax.random.split(key, 2 * num_layers + 8)

    def lin(kw, kb, fan_in, fan_out):
        s = 1.0 / math.sqrt(fan_in)
        w = jax.random.uniform(kw, (fan_in, fan_out), jnp.float32, -s, s)
        b = jax.random.uniform(kb, (fan_out,), jnp.float32, -s, s)
        return w, b

    # per-layer list (no dummy stack for num_layers == 1)
    gcn = [lin(ks[2 * l], ks[2 * l + 1], f_in if l == 0 else E, E)
           for l in range(num_layers)]
    o = 2 * num_layers
    proj = (lin(ks[o], ks[o + 1], E, H), lin(ks[o + 2], ks[o + 3], H, P))
    pred = None
    if with_predictor:
        pred = (lin(ks[o + 4], ks[o + 5], P, H), lin(ks[o + 6], ks[o + 7], H, P))
    return gcn, proj, pred


# ---------------------------------------------------------------------------
# main
# ---------------------------------------------------------------------------
if __name__ == "__main__":
    key = jax.random.PRNGKey(0)
    k_x, k_adj, k_on, k_tg = jax.random.split(key, 4)

    # small, module-consistent sizes
    B, N = 2, 16                             # batch of graphs, nodes per graph
    gnn_input_size = 8
    embedding_size = 32
    hidden_size = 64
    proj_output_size = embedding_size // 2   # default in build_model
    num_layers = 3

    # node features
    x = jax.random.normal(k_x, (B, N, gnn_input_size), jnp.float32)

    # random symmetric adjacency, self loops, symmetric normalization (GCNConv A_hat)
    a = (jax.random.uniform(k_adj, (B, N, N)) < 0.3).astype(jnp.float32)
    a = jnp.maximum(a, jnp.swapaxes(a, -1, -2))
    a = a + jnp.eye(N, dtype=jnp.float32)[None]
    deg = jnp.sum(a, axis=-1)
    d_inv_sqrt = 1.0 / jnp.sqrt(deg)
    adj = a * d_inv_sqrt[:, :, None] * d_inv_sqrt[:, None, :]

    online = init_branch(k_on, gnn_input_size, embedding_size, hidden_size,
                         proj_output_size, num_layers, with_predictor=True)
    target = init_branch(k_tg, gnn_input_size, embedding_size, hidden_size,
                         proj_output_size, num_layers, with_predictor=False)

    q_online, z_target = byol_forward(adj, x, online, target, num_layers)
    jax.block_until_ready((q_online, z_target))

    assert q_online.shape == (B, proj_output_size)
    assert z_target.shape == (B, proj_output_size)
    assert jnp.all(jnp.isfinite(q_online)) and jnp.all(jnp.isfinite(z_target))
    print("KERNEL_OK")
</pallas_src>

<mosaic_0001>
module attributes {stable_mosaic.version = 11 : i64} {
  func.func @_byol_fused_kernel(%arg0: memref<32x16xbf16, #tpu.memory_space<vmem>>, %arg1: memref<34x32xbf16, #tpu.memory_space<vmem>>, %arg2: memref<144x64xbf16, #tpu.memory_space<vmem>>, %arg3: memref<272x128xbf16, #tpu.memory_space<vmem>>, %arg4: memref<7x128xf32, #tpu.memory_space<vmem>>, %arg5: memref<2x16xf32, #tpu.memory_space<vmem>>, %arg6: memref<2x16xf32, #tpu.memory_space<vmem>>) attributes {dimension_semantics = [], scalar_prefetch = 0 : i64, scratch_operands = 0 : i64, tpu.core_type = #tpu.core_type<tc>} {
    %c0 = arith.constant 0 : index
    %c0_0 = arith.constant 0 : index
    %0 = vector.load %arg0[%c0, %c0_0] : memref<32x16xbf16, #tpu.memory_space<vmem>>, vector<32x16xbf16>
    %c0_1 = arith.constant 0 : index
    %c0_2 = arith.constant 0 : index
    %1 = vector.load %arg1[%c0_1, %c0_2] : memref<34x32xbf16, #tpu.memory_space<vmem>>, vector<32x32xbf16>
    %c32 = arith.constant 32 : index
    %c0_3 = arith.constant 0 : index
    %2 = vector.load %arg1[%c32, %c0_3] : memref<34x32xbf16, #tpu.memory_space<vmem>>, vector<2x32xbf16>
    %c0_4 = arith.constant 0 : index
    %c0_5 = arith.constant 0 : index
    %3 = vector.load %arg2[%c0_4, %c0_5] : memref<144x64xbf16, #tpu.memory_space<vmem>>, vector<16x64xbf16>
    %cst = arith.constant dense<0.000000e+00> : vector<32x64xf32>
    %4 = tpu.matmul %0, %3, %cst {dimension_numbers = #tpu.dot_dimension_numbers<[1], [0], [0], [1], [0, 0, 1, 1], [], []>} : vector<32x16xbf16>, vector<16x64xbf16>, vector<32x64xf32> -> vector<32x64xf32>
    %5 = arith.truncf %4 : vector<32x64xf32> to vector<32x64xbf16>
    %cst_6 = arith.constant dense<0.000000e+00> : vector<32x64xf32>
    %6 = tpu.matmul %1, %5, %cst_6 {dimension_numbers = #tpu.dot_dimension_numbers<[1], [0], [0], [1], [0, 0, 1, 1], [], []>} : vector<32x32xbf16>, vector<32x64xbf16>, vector<32x64xf32> -> vector<32x64xf32>
    %c0_7 = arith.constant 0 : index
    %c0_8 = arith.constant 0 : index
    %7 = vector.load %arg4[%c0_7, %c0_8] : memref<7x128xf32, #tpu.memory_space<vmem>>, vector<1x64xf32>
    %8 = vector.broadcast %7 : vector<1x64xf32> to vector<32x64xf32>
    %9 = arith.addf %6, %8 : vector<32x64xf32>
    %cst_9 = arith.constant 0.000000e+00 : f32
    %10 = vector.broadcast %cst_9 : f32 to vector<32x64xf32>
    %11 = arith.maximumf %9, %10 : vector<32x64xf32>
    %12 = arith.truncf %11 : vector<32x64xf32> to vector<32x64xbf16>
    %c16 = arith.constant 16 : index
    %c0_10 = arith.constant 0 : index
    %13 = vector.load %arg2[%c16, %c0_10] : memref<144x64xbf16, #tpu.memory_space<vmem>>, vector<64x64xbf16>
    %cst_11 = arith.constant dense<0.000000e+00> : vector<32x64xf32>
    %14 = tpu.matmul %12, %13, %cst_11 {dimension_numbers = #tpu.dot_dimension_numbers<[1], [0], [0], [1], [0, 0, 1, 1], [], []>} : vector<32x64xbf16>, vector<64x64xbf16>, vector<32x64xf32> -> vector<32x64xf32>
    %15 = arith.truncf %14 : vector<32x64xf32> to vector<32x64xbf16>
    %cst_12 = arith.constant dense<0.000000e+00> : vector<32x64xf32>
    %16 = tpu.matmul %1, %15, %cst_12 {dimension_numbers = #tpu.dot_dimension_numbers<[1], [0], [0], [1], [0, 0, 1, 1], [], []>} : vector<32x32xbf16>, vector<32x64xbf16>, vector<32x64xf32> -> vector<32x64xf32>
    %c1 = arith.constant 1 : index
    %c0_13 = arith.constant 0 : index
    %17 = vector.load %arg4[%c1, %c0_13] : memref<7x128xf32, #tpu.memory_space<vmem>>, vector<1x64xf32>
    %18 = vector.broadcast %17 : vector<1x64xf32> to vector<32x64xf32>
    %19 = arith.addf %16, %18 : vector<32x64xf32>
    %cst_14 = arith.constant 0.000000e+00 : f32
    %20 = vector.broadcast %cst_14 : f32 to vector<32x64xf32>
    %21 = arith.maximumf %19, %20 : vector<32x64xf32>
    %22 = arith.truncf %21 : vector<32x64xf32> to vector<32x64xbf16>
    %c80 = arith.constant 80 : index
    %c0_15 = arith.constant 0 : index
    %23 = vector.load %arg2[%c80, %c0_15] : memref<144x64xbf16, #tpu.memory_space<vmem>>, vector<64x64xbf16>
    %cst_16 = arith.constant dense<0.000000e+00> : vector<32x64xf32>
    %24 = tpu.matmul %22, %23, %cst_16 {dimension_numbers = #tpu.dot_dimension_numbers<[1], [0], [0], [1], [0, 0, 1, 1], [], []>} : vector<32x64xbf16>, vector<64x64xbf16>, vector<32x64xf32> -> vector<32x64xf32>
    %25 = arith.truncf %24 : vector<32x64xf32> to vector<32x64xbf16>
    %cst_17 = arith.constant dense<0.000000e+00> : vector<2x64xf32>
    %26 = tpu.matmul %2, %25, %cst_17 {dimension_numbers = #tpu.dot_dimension_numbers<[1], [0], [0], [1], [0, 0, 1, 1], [], []>} : vector<2x32xbf16>, vector<32x64xbf16>, vector<2x64xf32> -> vector<2x64xf32>
    %c2 = arith.constant 2 : index
    %c0_18 = arith.constant 0 : index
    %27 = vector.load %arg4[%c2, %c0_18] : memref<7x128xf32, #tpu.memory_space<vmem>>, vector<1x64xf32>
    %28 = vector.broadcast %27 : vector<1x64xf32> to vector<2x64xf32>
    %29 = arith.addf %26, %28 : vector<2x64xf32>
    %30 = arith.truncf %29 : vector<2x64xf32> to vector<2x64xbf16>
    %c0_19 = arith.constant 0 : index
    %c0_20 = arith.constant 0 : index
    %31 = vector.load %arg3[%c0_19, %c0_20] : memref<272x128xbf16, #tpu.memory_space<vmem>>, vector<64x128xbf16>
    %cst_21 = arith.constant dense<0.000000e+00> : vector<2x128xf32>
    %32 = tpu.matmul %30, %31, %cst_21 {dimension_numbers = #tpu.dot_dimension_numbers<[1], [0], [0], [1], [0, 0, 1, 1], [], []>} : vector<2x64xbf16>, vector<64x128xbf16>, vector<2x128xf32> -> vector<2x128xf32>
    %c3 = arith.constant 3 : index
    %c0_22 = arith.constant 0 : index
    %33 = vector.load %arg4[%c3, %c0_22] : memref<7x128xf32, #tpu.memory_space<vmem>>, vector<1x128xf32>
    %34 = vector.broadcast %33 : vector<1x128xf32> to vector<2x128xf32>
    %35 = arith.addf %32, %34 : vector<2x128xf32>
    %cst_23 = arith.constant 0.000000e+00 : f32
    %36 = vector.broadcast %cst_23 : f32 to vector<2x128xf32>
    %37 = arith.maximumf %35, %36 : vector<2x128xf32>
    %38 = arith.truncf %37 : vector<2x128xf32> to vector<2x128xbf16>
    %c64 = arith.constant 64 : index
    %c0_24 = arith.constant 0 : index
    %39 = vector.load %arg3[%c64, %c0_24] : memref<272x128xbf16, #tpu.memory_space<vmem>>, vector<128x32xbf16>
    %cst_25 = arith.constant dense<0.000000e+00> : vector<2x32xf32>
    %40 = tpu.matmul %38, %39, %cst_25 {dimension_numbers = #tpu.dot_dimension_numbers<[1], [0], [0], [1], [0, 0, 1, 1], [], []>} : vector<2x128xbf16>, vector<128x32xbf16>, vector<2x32xf32> -> vector<2x32xf32>
    %c4 = arith.constant 4 : index
    %c0_26 = arith.constant 0 : index
    %41 = vector.load %arg4[%c4, %c0_26] : memref<7x128xf32, #tpu.memory_space<vmem>>, vector<1x32xf32>
    %42 = vector.broadcast %41 : vector<1x32xf32> to vector<2x32xf32>
    %43 = arith.addf %40, %42 : vector<2x32xf32>
    %44 = vector.extract_strided_slice %43 {offsets = [0, 0], sizes = [2, 16], strides = [1, 1]} : vector<2x32xf32> to vector<2x16xf32>
    %45 = vector.extract_strided_slice %43 {offsets = [0, 16], sizes = [2, 16], strides = [1, 1]} : vector<2x32xf32> to vector<2x16xf32>
    %46 = arith.truncf %44 : vector<2x16xf32> to vector<2x16xbf16>
    %c192 = arith.constant 192 : index
    %c0_27 = arith.constant 0 : index
    %47 = vector.load %arg3[%c192, %c0_27] : memref<272x128xbf16, #tpu.memory_space<vmem>>, vector<16x64xbf16>
    %cst_28 = arith.constant dense<0.000000e+00> : vector<2x64xf32>
    %48 = tpu.matmul %46, %47, %cst_28 {dimension_numbers = #tpu.dot_dimension_numbers<[1], [0], [0], [1], [0, 0, 1, 1], [], []>} : vector<2x16xbf16>, vector<16x64xbf16>, vector<2x64xf32> -> vector<2x64xf32>
    %c5 = arith.constant 5 : index
    %c0_29 = arith.constant 0 : index
    %49 = vector.load %arg4[%c5, %c0_29] : memref<7x128xf32, #tpu.memory_space<vmem>>, vector<1x64xf32>
    %50 = vector.broadcast %49 : vector<1x64xf32> to vector<2x64xf32>
    %51 = arith.addf %48, %50 : vector<2x64xf32>
    %cst_30 = arith.constant 0.000000e+00 : f32
    %52 = vector.broadcast %cst_30 : f32 to vector<2x64xf32>
    %53 = arith.maximumf %51, %52 : vector<2x64xf32>
    %54 = arith.truncf %53 : vector<2x64xf32> to vector<2x64xbf16>
    %c208 = arith.constant 208 : index
    %c0_31 = arith.constant 0 : index
    %55 = vector.load %arg3[%c208, %c0_31] : memref<272x128xbf16, #tpu.memory_space<vmem>>, vector<64x16xbf16>
    %cst_32 = arith.constant dense<0.000000e+00> : vector<2x16xf32>
    %56 = tpu.matmul %54, %55, %cst_32 {dimension_numbers = #tpu.dot_dimension_numbers<[1], [0], [0], [1], [0, 0, 1, 1], [], []>} : vector<2x64xbf16>, vector<64x16xbf16>, vector<2x16xf32> -> vector<2x16xf32>
    %c6 = arith.constant 6 : index
    %c0_33 = arith.constant 0 : index
    %57 = vector.load %arg4[%c6, %c0_33] : memref<7x128xf32, #tpu.memory_space<vmem>>, vector<1x16xf32>
    %58 = vector.broadcast %57 : vector<1x16xf32> to vector<2x16xf32>
    %59 = arith.addf %56, %58 : vector<2x16xf32>
    %c0_34 = arith.constant 0 : index
    %c0_35 = arith.constant 0 : index
    %60 = vector.load %arg5[%c0_34, %c0_35] : memref<2x16xf32, #tpu.memory_space<vmem>>, vector<2x16xf32>
    tpu.vector_store %arg5[%c0_34, %c0_35], %59 {strides = array<i32>} : memref<2x16xf32, #tpu.memory_space<vmem>>, vector<2x16xf32>,
    %c0_36 = arith.constant 0 : index
    %c0_37 = arith.constant 0 : index
    %61 = vector.load %arg6[%c0_36, %c0_37] : memref<2x16xf32, #tpu.memory_space<vmem>>, vector<2x16xf32>
    tpu.vector_store %arg6[%c0_36, %c0_37], %45 {strides = array<i32>} : memref<2x16xf32, #tpu.memory_space<vmem>>, vector<2x16xf32>,
    return
  }
}

</mosaic_0001>

<bundles_post_ra>
// kernel: tpu_custom_call.1
= control target key start
LH: loop header
LB: loop body
LE: loop exit
PB: predicated region body
PF: predicated region fallthrough
CT: control target
= control target key end

     0   :  { %12 = vsyncpa [#allocation3], 0  ;;  %vm52_vm0 = vcmask 130048   ;;  %s938_s0 = inlined_call_operand.vmem [shape: bf16[32,16], index: 0, kind: input, shape index: {}]   ;;  %s939_s1 = inlined_call_operand.vmem [shape: bf16[34,32], index: 1, kind: input, shape index: {}]   ;;  %s940_s2 = inlined_call_operand.vmem [shape: bf16[144,64], index: 2, kind: input, shape index: {}]   ;;  %s941_s3 = inlined_call_operand.vmem [shape: bf16[272,128], index: 3, kind: input, shape index: {}]   ;;  %s942_s4 = inlined_call_operand.vmem [shape: f32[7,128], index: 4, kind: input, shape index: {}]   ;;  %s943_s5 = inlined_call_operand.hbm [shape: f32[2,16], index: 5, kind: output, shape index: {0}]   ;;  %s944_s6 = inlined_call_operand.hbm [shape: f32[2,16], index: 6, kind: output, shape index: {1}]  }
   0x1   :  { %v676_v0 = vld [vmem:[%s940_s2] sm:$0xff] }
   0x2   :  { %v672_v1 = vld [vmem:[%s938_s0] sm:$0xff]  ;;  %66 = vmatpush.bf16.msra.mxu0 %v676_v0 }
   0x3   :  { %13 = vsyncpa [#allocation5], 0  ;;  %v673_v2 = vld [vmem:[%s938_s0 + $0x8] sm:$0xff]  ;;  %v674_v9 = vld [vmem:[%s939_s1] sm:$0xff]  ;;  %vm92_vm1 = vcmask 261120   ;;  %vm156_vm2 = vcmask 523264  }
   0x4   :  { %v675_v10 = vld [vmem:[%s939_s1 + $0x8] sm:$0xff]  ;;  %v680_v11 = vld [vmem:[%s940_s2 + $0x20] sm:$0xff]  ;;  %v679_v12 = vld [vmem:[%s940_s2 + $0x18] sm:$0xff]  ;;  %s764_s9 = smov 112   ;;  %vm499_vm3 = vcmask 123904   ;;  %s765_s17 = smov [#allocation4]  }
   0x5   :  { %550 = vmatmul.msk.bf16.vlgmr.msra.gmra.mxu0 %vm52_vm0, %v672_v1  ;;  %167 = vmatpush.bf16.msra.mxu2 %v680_v11  ;;  %v678_v13 = vld [vmem:[%s940_s2 + $0x10] sm:$0xff]  ;;  %v677_v14 = vld [vmem:[%s940_s2 + $0x8] sm:$0xff]  ;;  %v705_v16 = vld [vmem:[%s942_s4] ss:$0 sm:$0xff]  ;;  %s522_s18 = sshll.u32 %s765_s17, 4  ;;  %s524_s20 = sshll.u32 %s944_s6, 4  ;;  %s523_s18 = int_to_ptr.vmem [resolvable:$true] %s522_s18  ;;  %s525_s20 = int_to_ptr.hbm [resolvable:$true] %s524_s20 }
   0x6   :  { %v684_v36 = vld [vmem:[%s940_s2 + $0x40] sm:$0xff]  ;;  %v683_v37 = vld [vmem:[%s940_s2 + $0x38] sm:$0xff]  ;;  %v682_v38 = vld [vmem:[%s940_s2 + $0x30] sm:$0xff]  ;;  %s766_s23 = smov [#allocation2]   ;;  %s513_s26 = sshll.u32 %s943_s5, 4  ;;  %s514_s26 = int_to_ptr.hbm [resolvable:$true] %s513_s26 }
   0x7   :  { %253 = vmatpush.bf16.msrb.mxu0 %v684_v36  ;;  %v681_v39 = vld [vmem:[%s940_s2 + $0x28] sm:$0xff]  ;;  %v706_v41 = vld [vmem:[%s942_s4 + $0x1] ss:$0 sm:$0xff]  ;;  %v688_v56 = vld [vmem:[%s941_s3 + $0x18] sm:$0xff]  ;;  %s511_s24 = sshll.u32 %s766_s23, 4  ;;  %s512_s24 = int_to_ptr.vmem [resolvable:$true] %s511_s24 }
   0x8   :  { %v687_v57 = vld [vmem:[%s941_s3 + $0x10] sm:$0xff]  ;;  %v686_v59 = vld [vmem:[%s941_s3 + $0x8] sm:$0xff]  ;;  %v685_v1 = vld [vmem:[%s941_s3] sm:$0xff] }
   0x9   :  { %168 = vmatpush.bf16.msra.mxu2 %v679_v12  ;;  %v33_v0 = vld [vmem:[%s939_s1 + $0x10] sm:$0x1] }
   0xb   :  { %254 = vmatpush.bf16.msrb.mxu0 %v683_v37 }
   0xd   :  { %169 = vmatpush.bf16.msra.mxu2 %v678_v13  ;;  %v690_v13 = vld [vmem:[%s941_s3 + $0x28] sm:$0xff] }
   0xf   :  { %255 = vmatpush.bf16.msrb.mxu0 %v682_v38  ;;  %v711_v38 = vld [vmem:[%s942_s4 + $0x6] ss:$0 sm:$0xff] }
  0x11   :  { %170 = vmatpush.bf16.msra.mxu2 %v677_v14  ;;  %v689_v14 = vld [vmem:[%s941_s3 + $0x20] sm:$0xff] }
  0x13   :  { %256 = vmatpush.bf16.msrb.mxu0 %v681_v39 }
  0x15   :  { %551 = vmatmul.msk.bf16.gmra.mxu0 %vm52_vm0, %v673_v2  ;;  %v696_v2 = vld [vmem:[%s941_s3 + $0x58] sm:$0xff] }
  0x16   :  { %407 = vmatpush.bf16.msrb.mxu2 %v696_v2 }
  0x82   :  { %v68_v3 = vpop.f32.mrf.mxu0 }
  0x8a   :  { %v70_v4 = vpop.f32.mrf.mxu0 }
  0x8b   :  { %v78_v8 = vpack.c.bf16 %v70_v4, %v68_v3  ;;  %v695_v3 = vld [vmem:[%s941_s3 + $0x50] sm:$0xff]  ;;  %v694_v4 = vld [vmem:[%s941_s3 + $0x48] sm:$0xff] }
  0x8c   :  { %408 = vmatpush.bf16.msrb.mxu2 %v695_v3 }
  0x90   :  { %409 = vmatpush.bf16.msrb.mxu2 %v694_v4 }
  0x92   :  { %v73_v5 = vpop.f32.mrf.mxu0 }
  0x9a   :  { %v75_v6 = vpop.f32.mrf.mxu0 }
  0x9b   :  { %v79_v7 = vpack.c.bf16 %v75_v6, %v73_v5  ;;  %v693_v5 = vld [vmem:[%s941_s3 + $0x40] sm:$0xff]  ;;  %v692_v6 = vld [vmem:[%s941_s3 + $0x38] sm:$0xff] }
  0x9c   :  { %410 = vmatpush.bf16.msrb.mxu2 %v693_v5 }
  0x9d   :  { %105 = vmatpush.bf16.msra.mxu1 %v79_v7  ;;  %v691_v7 = vld [vmem:[%s941_s3 + $0x30] sm:$0xff] }
  0xa0   :  { %411 = vmatpush.bf16.msrb.mxu2 %v692_v6 }
  0xa1   :  { %106 = vmatpush.bf16.msra.mxu1 %v78_v8  ;;  %v707_v8 = vld [vmem:[%s942_s4 + $0x2] ss:$0 sm:$0xff] }
  0xa4   :  { %560 = vmatmul.msk.bf16.vlgmr.msra.gmra.mxu1 %vm92_vm1, %v674_v9  ;;  %412 = vmatpush.bf16.msrb.mxu2 %v691_v7 }
  0xa8   :  { %413 = vmatpush.bf16.msrb.mxu2 %v690_v13 }
  0xac   :  { %414 = vmatpush.bf16.msrb.mxu2 %v689_v14 }
  0xb4   :  { %561 = vmatmul.msk.bf16.gmra.mxu1 %vm92_vm1, %v675_v10 }
 0x121   :  { %v108_v15 = vpop.f32.mrf.mxu1 }
 0x122   :  { %v109_v17 = vadd.f32 %v705_v16, %v108_v15  ;;  %v697_v15 = vld [vmem:[%s941_s3 + $0x60] sm:$0xff] }
 0x124   :  { %v118_v20 = vmax.f32 %v109_v17, 0.0 }
 0x129   :  { %v110_v18 = vpop.f32.mrf.mxu1 }
 0x12a   :  { %v111_v19 = vadd.f32 %v705_v16, %v110_v18 }
 0x12c   :  { %v119_v21 = vmax.f32 %v111_v19, 0.0 }
 0x12e   :  { %v122_v22 = vpack.c.bf16 %v119_v21, %v118_v20 }
 0x130   :  { %578 = vmatmul.msk.bf16.vlgmr.msra.gmra.mxu2 %vm156_vm2, %v122_v22  ;;  %v701_v22 = vld [vmem:[%s941_s3 + $0x80] sm:$0xff] }
 0x131   :  { %v113_v23 = vpop.f32.mrf.mxu1 }
 0x132   :  { %v114_v24 = vadd.f32 %v705_v16, %v113_v23  ;;  %v709_v23 = vld [vmem:[%s942_s4 + $0x4] ss:$0 sm:$0xff] }
 0x134   :  { %v120_v27 = vmax.f32 %v114_v24, 0.0 }
 0x139   :  { %v115_v25 = vpop.f32.mrf.mxu1 }
 0x13a   :  { %v116_v26 = vadd.f32 %v705_v16, %v115_v25  ;;  %v708_v16 = vld [vmem:[%s942_s4 + $0x3] ss:$0 sm:$0xff] }
 0x13c   :  { %v121_v28 = vmax.f32 %v116_v26, 0.0 }
 0x13e   :  { %v123_v29 = vpack.c.bf16 %v121_v28, %v120_v27  ;;  %v700_v28 = vld [vmem:[%s941_s3 + $0x78] sm:$0xff] }
 0x140   :  { %579 = vmatmul.msk.bf16.gmra.mxu2 %vm156_vm2, %v123_v29  ;;  %v699_v29 = vld [vmem:[%s941_s3 + $0x70] sm:$0xff] }
 0x1b3   :  { %v172_v30 = vpop.f32.mrf.mxu2 }
 0x1bb   :  { %v174_v31 = vpop.f32.mrf.mxu2 }
 0x1bc   :  { %v182_v35 = vpack.c.bf16 %v174_v31, %v172_v30  ;;  %v698_v30 = vld [vmem:[%s941_s3 + $0x68] sm:$0xff] }
 0x1c3   :  { %v177_v32 = vpop.f32.mrf.mxu2 }
 0x1cb   :  { %v179_v33 = vpop.f32.mrf.mxu2 }
 0x1cc   :  { %v183_v34 = vpack.c.bf16 %v179_v33, %v177_v32  ;;  %v710_v32 = vld [vmem:[%s942_s4 + $0x5] ss:$0 sm:$0xff] }
 0x1ce   :  { %192 = vmatpush.bf16.msra.mxu3 %v183_v34 }
 0x1d2   :  { %193 = vmatpush.bf16.msra.mxu3 %v182_v35 }
 0x1d5   :  { %580 = vmatmul.msk.bf16.vlgmr.msra.gmra.mxu3 %vm92_vm1, %v674_v9 }
 0x1d6   :  { %330 = vmatpush.bf16.msrb.mxu3 %v688_v56 }
 0x1da   :  { %331 = vmatpush.bf16.msrb.mxu3 %v687_v57 }
 0x1de   :  { %332 = vmatpush.bf16.msrb.mxu3 %v686_v59 }
 0x1e2   :  { %333 = vmatpush.bf16.msrb.mxu3 %v685_v1 }
 0x1e5   :  { %581 = vmatmul.msk.bf16.gmra.mxu3 %vm92_vm1, %v675_v10 }
 0x1e6   :  { %490 = vmatpush.bf16.msra.mxu3 %v701_v22 }
 0x1ea   :  { %491 = vmatpush.bf16.msra.mxu3 %v700_v28 }
 0x1ee   :  { %492 = vmatpush.bf16.msra.mxu3 %v699_v29 }
 0x1f2   :  { %493 = vmatpush.bf16.msra.mxu3 %v698_v30 }
 0x258   :  { %v195_v40 = vpop.f32.mrf.mxu3 }
 0x259   :  { %v196_v42 = vadd.f32 %v706_v41, %v195_v40 }
 0x25b   :  { %v205_v45 = vmax.f32 %v196_v42, 0.0 }
 0x260   :  { %v197_v43 = vpop.f32.mrf.mxu3 }
 0x261   :  { %v198_v44 = vadd.f32 %v706_v41, %v197_v43 }
 0x263   :  { %v206_v46 = vmax.f32 %v198_v44, 0.0 }
 0x265   :  { %v209_v47 = vpack.c.bf16 %v206_v46, %v205_v45 }
 0x267   :  { %598 = vmatmul.msk.bf16.vlgmr.msrb.gmra.mxu0 %vm156_vm2, %v209_v47 }
 0x268   :  { %v200_v48 = vpop.f32.mrf.mxu3 }
 0x269   :  { %v201_v49 = vadd.f32 %v706_v41, %v200_v48 }
 0x26b   :  { %v207_v52 = vmax.f32 %v201_v49, 0.0 }
 0x270   :  { %v202_v50 = vpop.f32.mrf.mxu3 }
 0x271   :  { %v203_v51 = vadd.f32 %v706_v41, %v202_v50 }
 0x273   :  { %v208_v53 = vmax.f32 %v203_v51, 0.0 }
 0x275   :  { %v210_v54 = vpack.c.bf16 %v208_v53, %v207_v52 }
 0x277   :  { %599 = vmatmul.msk.bf16.gmra.mxu0 %vm156_vm2, %v210_v54 }
 0x2e4   :  { %v258_v55 = vpop.f32.mrf.mxu0 }
 0x2ec   :  { %v260_v58 = vpop.f32.mrf.mxu0 }
 0x2ed   :  { %v268_v63 = vpack.c.bf16 %v260_v58, %v258_v55 }
 0x2f4   :  { %v263_v60 = vpop.f32.mrf.mxu0 }
 0x2fc   :  { %v265_v61 = vpop.f32.mrf.mxu0 }
 0x2fd   :  { %v269_v62 = vpack.c.bf16 %v265_v61, %v263_v60 }
 0x2ff   :  { %281 = vmatpush.bf16.msrb.mxu1 %v269_v62 }
 0x303   :  { %282 = vmatpush.bf16.msrb.mxu1 %v268_v63 }
 0x306   :  { %600 = vmatmul.msk.bf16.vlgmr.msrb.gmra.mxu1 %vm92_vm1, %v33_v0 }
 0x307   :  { %441 = vmatpush.bf16.msra.mxu1 %v697_v15 }
 0x383   :  { %v284_v9 = vpop.f32.mrf.mxu1 }
 0x384   :  { %v285_v10 = vadd.f32 %v707_v8, %v284_v9 }
 0x386   :  { %v288_v11 = vpack.c.bf16 %v285_v10, %v285_v10 }
 0x388   :  { %617 = vmatmul.msk.bf16.vlgmr.msrb.gmra.mxu3 %vm156_vm2, %v288_v11 }
 0x38b   :  { %v286_v12 = vpop.f32.mrf.mxu1 }
 0x40b   :  { %v335_v17 = vpop.f32.mrf.mxu3 }
 0x40c   :  { %v336_v18 = vadd.f32 %v708_v16, %v335_v17 }
 0x40e   :  { %v339_v19 = vmax.f32 %v336_v18, 0.0 }
 0x410   :  { %v340_v20 = vpack.c.bf16 %v339_v19, %v339_v19 }
 0x412   :  { %415 = vmatmul.bf16.vlgmr.msrb.gmra.mxu2 %v340_v20 }
 0x413   :  { %v337_v21 = vpop.f32.mrf.mxu3 }
 0x495   :  { %v416_v24 = vpop.f32.mrf.mxu2 }
 0x496   :  { %v417_v25 = vadd.f32 %v709_v23, %v416_v24 }
 0x498   :  { %v420_v26 = vpack.c.bf16 %v417_v25, %v417_v25  ;;  %502 = vrot.lane.b32.xlu0 %v417_v25, %s764_s9 }
 0x49a   :  { %654 = vmatmul.msk.bf16.vlgmr.msra.gmra.mxu1 %vm52_vm0, %v420_v26 }
 0x49d   :  { %v418_v27 = vpop.f32.mrf.mxu2 }
 0x50a   :  { %v503_v31 = vpop.permute.xlu0 %502 }
 0x50b   :  { %505 = vst.msk [vmem:[#allocation4] sm:$0x3] %vm499_vm3, %v503_v31 }
 0x50c   :  { %527 = dma.vmem_to_hbm [thread:$0]  %s523_s18, 32, %s525_s20, [#allocation5]  }
 0x517   :  { %v443_v33 = vpop.f32.mrf.mxu1 }
 0x518   :  { %v444_v34 = vadd.f32 %v710_v32, %v443_v33 }
 0x51a   :  { %v447_v35 = vmax.f32 %v444_v34, 0.0 }
 0x51c   :  { %v448_v36 = vpack.c.bf16 %v447_v35, %v447_v35 }
 0x51e   :  { %671 = vmatmul.msk.bf16.vlgmr.msra.gmra.mxu3 %vm156_vm2, %v448_v36 }
 0x51f   :  { %v445_v37 = vpop.f32.mrf.mxu1 }
 0x5a1   :  { %v495_v39 = vpop.f32.mrf.mxu3 }
 0x5a2   :  { %v496_v40 = vadd.f32 %v711_v38, %v495_v39 }
 0x5a4   :  { %500 = vst.msk [vmem:[#allocation2] sm:$0x3] %vm499_vm3, %v496_v40 }
 0x5a5   :  { %516 = dma.vmem_to_hbm [thread:$0]  %s512_s24, 32, %s514_s26, [#allocation3]  }
 0x5a9   :  { %v497_v41 = vpop.f32.mrf.mxu3 }
 0x5aa   :  { %760 = dma.done.wait [#allocation3], 32  }
 0x5ab   :  { %761 = vsyncadd [#allocation3], 4294967264 }
 0x5ac   :  { %762 = dma.done.wait [#allocation5], 32  }
 0x5ad   :  { %763 = vsyncadd [#allocation5], 4294967264 }
 0x5ae   :  { %536 = vsyncpa [#allocation3], 1 }
 0x5af   :  { %537 = vsyncpa [#allocation5], 1 }

</bundles_post_ra>
